<compile_context>
chip_gen: v6e
topology: v6e:2x2x1
jax: 0.10.0
libtpu: 0.0.40
codegen_flags: <defaults>
</compile_context>

<pallas_src>
import numpy as np

import jax
import jax.numpy as jnp
from jax.experimental import pallas as pl
from jax.experimental.pallas import tpu as pltpu


# ----------------------------- helpers -----------------------------

def _round_up(n: int, m: int) -> int:
    return ((n + m - 1) // m) * m


def _pad_batch(state):
    """Pad batch to a sublane multiple (8), or to 128 if it will be tiled."""
    b = state.shape[0]
    b_pad = _round_up(b, 8) if b <= 128 else _round_up(b, 128)
    if b_pad != b:
        state = jnp.pad(state, ((0, b_pad - b), (0, 0)))
    return state, b_pad


def _build_combine_matrix(action_dims, out_pad):
    """D = I + C such that  out = y @ D  implements the dueling combine.

    y layout (lane axis): [value | adv_head0 | adv_head1 | ... | zero pad]
    out layout:           [value | q_head0   | q_head1   | ... | zeros]
    with q = value + adv - mean_head(adv).
    """
    d = np.eye(out_pad, dtype=np.float32)
    off = 1
    for a in action_dims:
        cols = slice(off, off + a)
        d[0, cols] += 1.0                     # add value (column 0 of y)
        d[off:off + a, cols] -= 1.0 / float(a)  # subtract per-head mean
        off += a
    return jnp.asarray(d)


# ----------------------------- fused kernels -----------------------------

def _make_fused_dueling_kernel(n_feature_layers: int):
    def kernel(*refs):
        out_ref = refs[-1]
        x = refs[0][...]
        idx = 1
        for _ in range(n_feature_layers):
            w = refs[idx][...]
            b = refs[idx + 1][...]
            idx += 2
            x = jnp.maximum(
                jnp.dot(x, w, preferred_element_type=jnp.float32) + b, 0.0)
        # Concatenated first layer of value + all advantage streams.
        w1 = refs[idx][...]
        b1 = refs[idx + 1][...]
        # Block-diagonal second layer producing [value | adv0 | adv1 | ... | 0pad].
        w2 = refs[idx + 2][...]
        b2 = refs[idx + 3][...]
        dmat = refs[idx + 4][...]
        h = jnp.maximum(
            jnp.dot(x, w1, preferred_element_type=jnp.float32) + b1, 0.0)
        y = jnp.dot(h, w2, preferred_element_type=jnp.float32) + b2
        # Dueling combine fused as one lane-dense matmul: out = y @ (I + C).
        out_ref[...] = jnp.dot(
            y, dmat, preferred_element_type=jnp.float32).astype(out_ref.dtype)
    return kernel


def _make_fused_head_kernel(n_feature_layers: int):
    def kernel(*refs):
        out_ref = refs[-1]
        x = refs[0][...]
        idx = 1
        for _ in range(n_feature_layers):
            w = refs[idx][...]
            b = refs[idx + 1][...]
            idx += 2
            x = jnp.maximum(
                jnp.dot(x, w, preferred_element_type=jnp.float32) + b, 0.0)
        wcat = refs[idx][...]
        bcat = refs[idx + 1][...]
        out_ref[...] = (
            jnp.dot(x, wcat, preferred_element_type=jnp.float32) + bcat
        ).astype(out_ref.dtype)
    return kernel


def _fused_pallas_call(kernel, operands, b_pad, out_pad):
    out_shape = jax.ShapeDtypeStruct((b_pad, out_pad), jnp.float32)
    if b_pad <= 128:
        # Single VMEM-resident tile: no grid (everything mapped whole into VMEM).
        return pl.pallas_call(kernel, out_shape=out_shape)(*operands)

    # Large batch: tile batch as a "parallel" grid axis (megacore on v7x),
    # weights replicated (same full block every step, stays VMEM-resident).
    tb = 128
    nb = b_pad // tb
    x = operands[0]
    in_specs = [pl.BlockSpec((tb, x.shape[1]), lambda i: (i, 0))]
    in_specs += [pl.BlockSpec(op.shape, lambda i: (0, 0)) for op in operands[1:]]
    return pl.pallas_call(
        kernel,
        out_shape=out_shape,
        grid=(nb,),
        in_specs=in_specs,
        out_specs=pl.BlockSpec((tb, out_pad), lambda i: (i, 0)),
        compiler_params=pltpu.CompilerParams(
            dimension_semantics=("parallel",)),
    )(*operands)


# ----------------------------- parameters -----------------------------

def _init_linear(key, in_features, out_features):
    """Deterministic PyTorch-style init: U(-1/sqrt(in), 1/sqrt(in))."""
    k_w, k_b = jax.random.split(key)
    bound = 1.0 / jnp.sqrt(jnp.float32(in_features))
    w = jax.random.uniform(
        k_w, (in_features, out_features), jnp.float32, -bound, bound)
    b = jax.random.uniform(k_b, (1, out_features), jnp.float32, -bound, bound)
    return w, b


def init_qnetwork_params(key, state_size, action_dims, hidden_layers, dueling):
    params = {}
    keys = jax.random.split(key, 64)
    ki = 0

    feats = []
    in_size = state_size
    for h in hidden_layers:
        feats.append(_init_linear(keys[ki], in_size, h))
        ki += 1
        in_size = h
    params["feature"] = feats

    last_h = hidden_layers[-1]
    if dueling:
        half = last_h // 2
        params["value"] = [
            _init_linear(keys[ki], last_h, half),
            _init_linear(keys[ki + 1], half, 1),
        ]
        ki += 2
        adv = []
        for a_dim in action_dims:
            adv.append([
                _init_linear(keys[ki], last_h, half),
                _init_linear(keys[ki + 1], half, a_dim),
            ])
            ki += 2
        params["advantage"] = adv
    else:
        outs = []
        for a_dim in action_dims:
            outs.append(_init_linear(keys[ki], last_h, a_dim))
            ki += 1
        params["output"] = outs
    return params


def pack_qnetwork_params(params, action_dims, dueling):
    """One-time packing of per-head weights into fused, lane-dense operands."""
    packed = {
        "feature": params["feature"],
        "dueling": dueling,
        "action_dims": tuple(int(a) for a in action_dims),
    }
    a_total = int(sum(action_dims))

    if dueling:
        (wv1, bv1), (wv2, bv2) = params["value"]
        half = wv1.shape[1]
        num_heads = len(action_dims)
        out_pad = _round_up(1 + a_total, 128)

        w1_parts, b1_parts = [wv1], [bv1]
        w2blk = jnp.zeros((half * (1 + num_heads), out_pad), jnp.float32)
        b2blk = jnp.zeros((1, out_pad), jnp.float32)
        w2blk = w2blk.at[0:half, 0:1].set(wv2)
        b2blk = b2blk.at[:, 0:1].set(bv2)

        off = 1
        for j, ((wa1, ba1), (wa2, ba2)) in enumerate(params["advantage"]):
            a = int(action_dims[j])
            w1_parts.append(wa1)
            b1_parts.append(ba1)
            r0 = half * (1 + j)
            w2blk = w2blk.at[r0:r0 + half, off:off + a].set(wa2)
            b2blk = b2blk.at[:, off:off + a].set(ba2)
            off += a

        packed["streams"] = (
            jnp.concatenate(w1_parts, axis=1),
            jnp.concatenate(b1_parts, axis=1),
            w2blk,
            b2blk,
            _build_combine_matrix(action_dims, out_pad),
        )
        packed["out_pad"] = out_pad
    else:
        out_pad = _round_up(a_total, 128)
        wcat = jnp.concatenate([w for (w, _) in params["output"]], axis=1)
        bcat = jnp.concatenate([b for (_, b) in params["output"]], axis=1)
        pad = out_pad - wcat.shape[1]
        wcat = jnp.pad(wcat, ((0, 0), (0, pad)))
        bcat = jnp.pad(bcat, ((0, 0), (0, pad)))
        packed["head"] = (wcat, bcat)
        packed["out_pad"] = out_pad
    return packed


# ----------------------------- forward pass -----------------------------

def qnetwork_forward(packed, state):
    """Matches QNetwork.forward: returns (list of q_value arrays, value|None)."""
    action_dims = packed["action_dims"]
    dueling = packed["dueling"]
    out_pad = packed["out_pad"]
    n_feat = len(packed["feature"])

    b = state.shape[0]
    x_pad, b_pad = _pad_batch(state.astype(jnp.float32))

    operands = [x_pad]
    for (w, bias) in packed["feature"]:
        operands += [w, bias]
    if dueling:
        operands += list(packed["streams"])
        kernel = _make_fused_dueling_kernel(n_feat)
    else:
        operands += list(packed["head"])
        kernel = _make_fused_head_kernel(n_feat)

    slab = _fused_pallas_call(kernel, operands, b_pad, out_pad)[:b]

    if dueling:
        value = slab[:, 0:1]
        off = 1
    else:
        value = None
        off = 0
    q_values = []
    for a in action_dims:
        q_values.append(slab[:, off:off + a])
        off += a
    return q_values, value


# Pure-JAX reference (per-layer, per-head, highest precision matmuls).
def _ref_forward(params, state, dueling):
    hp = jax.lax.Precision.HIGHEST

    def lin(x, w, b):
        return jnp.dot(x, w, precision=hp) + b

    x = state
    for (w, b) in params["feature"]:
        x = jnp.maximum(lin(x, w, b), 0.0)
    if dueling:
        (wv1, bv1), (wv2, bv2) = params["value"]
        value = lin(jnp.maximum(lin(x, wv1, bv1), 0.0), wv2, bv2)
        qs = []
        for (wa1, ba1), (wa2, ba2) in params["advantage"]:
            adv = lin(jnp.maximum(lin(x, wa1, ba1), 0.0), wa2, ba2)
            qs.append(value + (adv - adv.mean(axis=1, keepdims=True)))
        return qs, value
    return [lin(x, w, b) for (w, b) in params["output"]], None


# ----------------------------- main -----------------------------

if __name__ == "__main__":
    key = jax.random.PRNGKey(0)
    k_state, k_params_d, k_params_nd = jax.random.split(key, 3)

    batch = 2
    state_size = 8
    hidden_layers = [32, 32]
    action_dims = [4, 3]

    state = jax.random.normal(k_state, (batch, state_size), jnp.float32)

    # Tolerance covers MXU matmul precision vs. the HIGHEST-precision reference;
    # structural/packing errors would be orders of magnitude larger.
    ATOL = RTOL = 2e-3

    ok = True
    for dueling, k_params in ((True, k_params_d), (False, k_params_nd)):
        params = init_qnetwork_params(
            k_params, state_size, action_dims, hidden_layers, dueling)
        packed = pack_qnetwork_params(params, action_dims, dueling)

        q_values, value = qnetwork_forward(packed, state)
        q_values = [jax.block_until_ready(q) for q in q_values]
        if value is not None:
            value = jax.block_until_ready(value)

        q_ref, v_ref = _ref_forward(params, state, dueling)
        for q, qr, a_dim in zip(q_values, q_ref, action_dims):
            assert q.shape == (batch, a_dim)
            ok &= bool(jnp.allclose(q, qr, atol=ATOL, rtol=RTOL))
        if dueling:
            assert value.shape == (batch, 1)
            ok &= bool(jnp.allclose(value, v_ref, atol=ATOL, rtol=RTOL))
        else:
            assert value is None

    print("KERNEL_OK" if ok else "MISMATCH")
</pallas_src>

<mosaic_0001>
module attributes {stable_mosaic.version = 11 : i64} {
  func.func @kernel(%arg0: memref<8x8xf32, #tpu.memory_space<vmem>>, %arg1: memref<8x32xf32, #tpu.memory_space<vmem>>, %arg2: memref<1x32xf32, #tpu.memory_space<vmem>>, %arg3: memref<32x32xf32, #tpu.memory_space<vmem>>, %arg4: memref<1x32xf32, #tpu.memory_space<vmem>>, %arg5: memref<32x48xf32, #tpu.memory_space<vmem>>, %arg6: memref<1x48xf32, #tpu.memory_space<vmem>>, %arg7: memref<48x128xf32, #tpu.memory_space<vmem>>, %arg8: memref<1x128xf32, #tpu.memory_space<vmem>>, %arg9: memref<128x128xf32, #tpu.memory_space<vmem>>, %arg10: memref<8x128xf32, #tpu.memory_space<vmem>>) attributes {dimension_semantics = [], scalar_prefetch = 0 : i64, scratch_operands = 0 : i64, tpu.core_type = #tpu.core_type<tc>} {
    %c0 = arith.constant 0 : index
    %c0_0 = arith.constant 0 : index
    %0 = vector.load %arg0[%c0, %c0_0] : memref<8x8xf32, #tpu.memory_space<vmem>>, vector<8x8xf32>
    %c0_1 = arith.constant 0 : index
    %c0_2 = arith.constant 0 : index
    %1 = vector.load %arg1[%c0_1, %c0_2] : memref<8x32xf32, #tpu.memory_space<vmem>>, vector<8x32xf32>
    %c0_3 = arith.constant 0 : index
    %c0_4 = arith.constant 0 : index
    %2 = vector.load %arg2[%c0_3, %c0_4] : memref<1x32xf32, #tpu.memory_space<vmem>>, vector<1x32xf32>
    %cst = arith.constant dense<0.000000e+00> : vector<8x32xf32>
    %3 = tpu.matmul %0, %1, %cst {dimension_numbers = #tpu.dot_dimension_numbers<[1], [0], [0], [1], [0, 0, 1, 1], [], []>} : vector<8x8xf32>, vector<8x32xf32>, vector<8x32xf32> -> vector<8x32xf32>
    %4 = vector.broadcast %2 : vector<1x32xf32> to vector<8x32xf32>
    %5 = arith.addf %3, %4 : vector<8x32xf32>
    %cst_5 = arith.constant 0.000000e+00 : f32
    %6 = vector.broadcast %cst_5 : f32 to vector<8x32xf32>
    %7 = arith.maximumf %5, %6 : vector<8x32xf32>
    %c0_6 = arith.constant 0 : index
    %c0_7 = arith.constant 0 : index
    %8 = vector.load %arg3[%c0_6, %c0_7] : memref<32x32xf32, #tpu.memory_space<vmem>>, vector<32x32xf32>
    %c0_8 = arith.constant 0 : index
    %c0_9 = arith.constant 0 : index
    %9 = vector.load %arg4[%c0_8, %c0_9] : memref<1x32xf32, #tpu.memory_space<vmem>>, vector<1x32xf32>
    %cst_10 = arith.constant dense<0.000000e+00> : vector<8x32xf32>
    %10 = tpu.matmul %7, %8, %cst_10 {dimension_numbers = #tpu.dot_dimension_numbers<[1], [0], [0], [1], [0, 0, 1, 1], [], []>} : vector<8x32xf32>, vector<32x32xf32>, vector<8x32xf32> -> vector<8x32xf32>
    %11 = vector.broadcast %9 : vector<1x32xf32> to vector<8x32xf32>
    %12 = arith.addf %10, %11 : vector<8x32xf32>
    %cst_11 = arith.constant 0.000000e+00 : f32
    %13 = vector.broadcast %cst_11 : f32 to vector<8x32xf32>
    %14 = arith.maximumf %12, %13 : vector<8x32xf32>
    %c0_12 = arith.constant 0 : index
    %c0_13 = arith.constant 0 : index
    %15 = vector.load %arg5[%c0_12, %c0_13] : memref<32x48xf32, #tpu.memory_space<vmem>>, vector<32x48xf32>
    %c0_14 = arith.constant 0 : index
    %c0_15 = arith.constant 0 : index
    %16 = vector.load %arg6[%c0_14, %c0_15] : memref<1x48xf32, #tpu.memory_space<vmem>>, vector<1x48xf32>
    %c0_16 = arith.constant 0 : index
    %c0_17 = arith.constant 0 : index
    %17 = vector.load %arg7[%c0_16, %c0_17] : memref<48x128xf32, #tpu.memory_space<vmem>>, vector<48x128xf32>
    %c0_18 = arith.constant 0 : index
    %c0_19 = arith.constant 0 : index
    %18 = vector.load %arg8[%c0_18, %c0_19] : memref<1x128xf32, #tpu.memory_space<vmem>>, vector<1x128xf32>
    %c0_20 = arith.constant 0 : index
    %c0_21 = arith.constant 0 : index
    %19 = vector.load %arg9[%c0_20, %c0_21] : memref<128x128xf32, #tpu.memory_space<vmem>>, vector<128x128xf32>
    %cst_22 = arith.constant dense<0.000000e+00> : vector<8x48xf32>
    %20 = tpu.matmul %14, %15, %cst_22 {dimension_numbers = #tpu.dot_dimension_numbers<[1], [0], [0], [1], [0, 0, 1, 1], [], []>} : vector<8x32xf32>, vector<32x48xf32>, vector<8x48xf32> -> vector<8x48xf32>
    %21 = vector.broadcast %16 : vector<1x48xf32> to vector<8x48xf32>
    %22 = arith.addf %20, %21 : vector<8x48xf32>
    %cst_23 = arith.constant 0.000000e+00 : f32
    %23 = vector.broadcast %cst_23 : f32 to vector<8x48xf32>
    %24 = arith.maximumf %22, %23 : vector<8x48xf32>
    %cst_24 = arith.constant dense<0.000000e+00> : vector<8x128xf32>
    %25 = tpu.matmul %24, %17, %cst_24 {dimension_numbers = #tpu.dot_dimension_numbers<[1], [0], [0], [1], [0, 0, 1, 1], [], []>} : vector<8x48xf32>, vector<48x128xf32>, vector<8x128xf32> -> vector<8x128xf32>
    %26 = vector.broadcast %18 : vector<1x128xf32> to vector<8x128xf32>
    %27 = arith.addf %25, %26 : vector<8x128xf32>
    %cst_25 = arith.constant dense<0.000000e+00> : vector<8x128xf32>
    %28 = tpu.matmul %27, %19, %cst_25 {dimension_numbers = #tpu.dot_dimension_numbers<[1], [0], [0], [1], [0, 0, 1, 1], [], []>} : vector<8x128xf32>, vector<128x128xf32>, vector<8x128xf32> -> vector<8x128xf32>
    %c0_26 = arith.constant 0 : index
    %c0_27 = arith.constant 0 : index
    %29 = vector.load %arg10[%c0_26, %c0_27] : memref<8x128xf32, #tpu.memory_space<vmem>>, vector<8x128xf32>
    tpu.vector_store %arg10[%c0_26, %c0_27], %28 {strides = array<i32>} : memref<8x128xf32, #tpu.memory_space<vmem>>, vector<8x128xf32>,
    return
  }
}

</mosaic_0001>

<bundles_post_ra>
// kernel: tpu_custom_call.1
= control target key start
LH: loop header
LB: loop body
LE: loop exit
PB: predicated region body
PF: predicated region fallthrough
CT: control target
= control target key end

     0   :  { %15 = vsyncpa [#allocation3], 0  ;;  %s997_s0 = inlined_call_operand.hbm [shape: f32[8,8], index: 0, kind: input, shape index: {}]   ;;  %s998_s1 = inlined_call_operand.hbm [shape: f32[8,32], index: 1, kind: input, shape index: {}]   ;;  %s999_s2 = inlined_call_operand.vmem [shape: f32[1,32], index: 2, kind: input, shape index: {}]   ;;  %s1000_s3 = inlined_call_operand.hbm [shape: f32[32,32], index: 3, kind: input, shape index: {}]   ;;  %s1001_s4 = inlined_call_operand.vmem [shape: f32[1,32], index: 4, kind: input, shape index: {}]   ;;  %s1002_s5 = inlined_call_operand.hbm [shape: f32[32,48], index: 5, kind: input, shape index: {}]   ;;  %s1003_s6 = inlined_call_operand.vmem [shape: f32[1,48], index: 6, kind: input, shape index: {}]   ;;  %s1004_s7 = inlined_call_operand.hbm [shape: f32[48,128], index: 7, kind: input, shape index: {}]   ;;  %s1005_s8 = inlined_call_operand.vmem [shape: f32[1,128], index: 8, kind: input, shape index: {}]   ;;  %s1006_s9 = inlined_call_operand.hbm [shape: f32[128,128], index: 9, kind: input, shape index: {}]   ;;  %s1007_s10 = inlined_call_operand.hbm [shape: f32[8,128], index: 10, kind: output, shape index: {}]  }
   0x1   :  { %16 = vsyncpa [#allocation6], 0 }
   0x2   :  { %17 = vsyncpa [#allocation9], 0 }
   0x3   :  { %18 = vsyncpa [#allocation12], 0 }
   0x4   :  { %19 = vsyncpa [#allocation4], 0  ;;  %s843_s13 = smov [#allocation5]  }
   0x5   :  { %s36_s14 = sshll.u32 %s843_s13, 4  ;;  %s37_s14 = int_to_ptr.vmem [resolvable:$true] %s36_s14 }
   0x6   :  { %s701_s15 = scalar_lea.vmem %s37_s14, 128  ;;  %p706_p1 = scmp.lt.s32.totalorder %s37_s14, %s37_s14 }
   0x7   :  { %p702_p0 = scmp.ne.s32.totalorder %s37_s14, %s701_s15  ;;  %p707_p2 = scmp.lt.s32.totalorder %s701_s15, %s701_s15 }
   0x9   :  { %p708_p3 = por %p707_p2, %p706_p1 }
   0xb   :  { %p709_p4 = pnand %p708_p3, %p702_p0 }
   0xd   :  { %712 = shalt.err (!%p709_p4)
}
   0xe   :  { %39 = dma.hbm_to_vmem [thread:$0]  %s998_s1, 128, %s37_s14, [#allocation6]  }
   0xf   :  { %s844_s18 = smov [#allocation8]   ;;  %s845_s20 = smov [#allocation2]  }
  0x10   :  { %s61_s19 = sshll.u32 %s844_s18, 4  ;;  %s26_s21 = sshll.u32 %s845_s20, 4  ;;  %s62_s19 = int_to_ptr.vmem [resolvable:$true] %s61_s19  ;;  %s27_s21 = int_to_ptr.vmem [resolvable:$true] %s26_s21 }
  0x11   :  { %s721_s22 = scalar_lea.vmem %s62_s19, 512  ;;  %p726_p6 = scmp.lt.s32.totalorder %s62_s19, %s62_s19 }
  0x12   :  { %p722_p5 = scmp.ne.s32.totalorder %s62_s19, %s721_s22  ;;  %p727_p7 = scmp.lt.s32.totalorder %s721_s22, %s721_s22 }
  0x14   :  { %p728_p8 = por %p727_p7, %p726_p6 }
  0x16   :  { %p729_p9 = pnand %p728_p8, %p722_p5 }
  0x18   :  { %732 = shalt.err (!%p729_p9)
}
  0x19   :  { %s846_s23 = smov 128   ;;  %s847_s24 = smov 8  }
  0x1a   :  { %67 = dma.hbm_to_vmem [thread:$0]  %s1002_s5, 512, %s62_s19, [#allocation9], %s846_s23, %s846_s23, %s847_s24  }
  0x1b   :  { %s741_s1 = scalar_lea.vmem %s27_s21, 128  ;;  %p746_p11 = scmp.lt.s32.totalorder %s27_s21, %s27_s21 }
  0x1c   :  { %p742_p10 = scmp.ne.s32.totalorder %s27_s21, %s741_s1  ;;  %p747_p12 = scmp.lt.s32.totalorder %s741_s1, %s741_s1 }
  0x1e   :  { %p748_p13 = por %p747_p12, %p746_p11 }
  0x20   :  { %p749_p0 = pnand %p748_p13, %p742_p10 }
  0x22   :  { %752 = shalt.err (!%p749_p0)
}
  0x23   :  { %29 = dma.hbm_to_vmem [thread:$0]  %s997_s0, 128, %s27_s21, [#allocation3]  }
  0x24   :  { %s848_s29 = smov [#allocation7]   ;;  %s849_s11 = smov [#allocation10]  }
  0x25   :  { %s47_s30 = sshll.u32 %s848_s29, 4  ;;  %s75_s12 = sshll.u32 %s849_s11, 4  ;;  %s48_s30 = int_to_ptr.vmem [resolvable:$true] %s47_s30  ;;  %s76_s12 = int_to_ptr.vmem [resolvable:$true] %s75_s12 }
  0x26   :  { %s761_s13 = scalar_lea.vmem %s48_s30, 512  ;;  %p766_p2 = scmp.lt.s32.totalorder %s48_s30, %s48_s30 }
  0x27   :  { %p762_p1 = scmp.ne.s32.totalorder %s48_s30, %s761_s13  ;;  %p767_p3 = scmp.lt.s32.totalorder %s761_s13, %s761_s13 }
  0x29   :  { %p768_p4 = por %p767_p3, %p766_p2 }
  0x2b   :  { %p769_p5 = pnand %p768_p4, %p762_p1 }
  0x2d   :  { %772 = shalt.err (!%p769_p5)
}
  0x2e   :  { %53 = dma.hbm_to_vmem [thread:$0]  %s1000_s3, 512, %s48_s30, [#allocation6], %s846_s23, %s846_s23, %s847_s24  }
  0x2f   :  { %s781_s0 = scalar_lea.vmem %s76_s12, 768  ;;  %p786_p7 = scmp.lt.s32.totalorder %s76_s12, %s76_s12 }
  0x30   :  { %p782_p6 = scmp.ne.s32.totalorder %s76_s12, %s781_s0  ;;  %p787_p8 = scmp.lt.s32.totalorder %s781_s0, %s781_s0 }
  0x32   :  { %p788_p9 = por %p787_p8, %p786_p7 }
  0x34   :  { %p789_p10 = pnand %p788_p9, %p782_p6 }
  0x36   :  { %792 = shalt.err (!%p789_p10)
}
  0x37   :  { %81 = dma.hbm_to_vmem [thread:$0]  %s1004_s7, 768, %s76_s12, [#allocation9], %s846_s23, %s846_s23, %s847_s24  }
  0x38   :  { %s850_s17 = smov [#allocation11]  }
  0x39   :  { %s89_s18 = sshll.u32 %s850_s17, 4  ;;  %s90_s18 = int_to_ptr.vmem [resolvable:$true] %s89_s18 }
  0x3a   :  { %s801_s19 = scalar_lea.vmem %s90_s18, 2048  ;;  %p806_p12 = scmp.lt.s32.totalorder %s90_s18, %s90_s18 }
  0x3b   :  { %p802_p11 = scmp.ne.s32.totalorder %s90_s18, %s801_s19  ;;  %p807_p13 = scmp.lt.s32.totalorder %s801_s19, %s801_s19 }
  0x3d   :  { %p808_p0 = por %p807_p13, %p806_p12 }
  0x3f   :  { %p809_p1 = pnand %p808_p0, %p802_p11 }
  0x41   :  { %812 = shalt.err (!%p809_p1)
}
  0x42   :  { %95 = dma.hbm_to_vmem [thread:$0]  %s1006_s9, 2048, %s90_s18, [#allocation12], %s846_s23, %s846_s23, %s847_s24  }
  0x43   :  { %833 = dma.done.wait [#allocation3], 128  }
  0x44   :  { %834 = vsyncadd [#allocation3], 4294967168 }
  0x45   :  { %835 = dma.done.wait [#allocation6], 640  }
  0x46   :  { %836 = vsyncadd [#allocation6], 4294966656 }
  0x47   :  { %837 = dma.done.wait [#allocation9], 1280  }
  0x48   :  { %838 = vsyncadd [#allocation9], 4294966016 }
  0x49   :  { %839 = dma.done.wait [#allocation12], 2048  }
  0x4a   :  { %840 = vsyncadd [#allocation12], 4294965248  ;;  %v851_v0 = vmov 0.0   ;;  %vm852_vm0 = vmmov 0   ;;  %vm123_vm1 = vcmask 64512   ;;  %v115_v1 = vld [vmem:[#allocation5] sm:$0xff] }
  0x4b   :  { %605 = vmatprep.subr.mxu1 %v851_v0  ;;  %607 = vmatprep.mubr.msk.f32.mxu1 %vm852_vm0, %v851_v0  ;;  %v114_v2 = vld [vmem:[#allocation2] sm:$0xff]  ;;  %v201_v3 = vld [vmem:[#allocation7 + $0x18] sm:$0xff]  ;;  %v199_v5 = vld [vmem:[#allocation7 + $0x8] sm:$0xff]  ;;  %vm209_vm2 = vcmask 261120   ;;  %vm398_vm3 = vcmask 392192  }
  0x4c   :  { %647 = vmatprep.subr.mxu0 %v851_v0  ;;  %679 = vmatprep.mubr.msk.f32.mxu0 %vm852_vm0, %v851_v0  ;;  %v200_v4 = vld [vmem:[#allocation7 + $0x10] sm:$0xff]  ;;  %v198_v6 = vld [vmem:[#allocation7] sm:$0xff]  ;;  %v287_v12 = vld [vmem:[#allocation8 + $0x18] sm:$0xff] }
  0x4d   :  { %606 = vmatpush3.msra.mxu1 %v115_v1  ;;  %v561_v7 = vld [vmem:[%s999_s2] ss:$0 sm:$0xff]  ;;  %v285_v14 = vld [vmem:[#allocation8 + $0x8] sm:$0xff]  ;;  %v284_v15 = vld [vmem:[#allocation8] sm:$0xff] }
  0x4e   :  { %608 = vmatmul.mubr.msk.f32.vlgmr.msra.gmra.mxu1 %vm123_vm1, %v114_v2  ;;  %610 = vmatprep.subr.mxu1 %v851_v0  ;;  %v286_v13 = vld [vmem:[#allocation8 + $0x10] sm:$0xff]  ;;  %v294_v21 = vld [vmem:[#allocation10 + $0x28] sm:$0xff]  ;;  %v293_v22 = vld [vmem:[#allocation10 + $0x20] sm:$0xff] }
  0x4f   :  { %611 = vmatpush3.msra.mxu1 %v201_v3  ;;  %618 = vmatprep.mubr.msk.f32.mxu1 %vm852_vm0, %v851_v0  ;;  %v563_v16 = vld [vmem:[%s1001_s4] ss:$0 sm:$0xff]  ;;  %v292_v23 = vld [vmem:[#allocation10 + $0x18] sm:$0xff]  ;;  %v290_v25 = vld [vmem:[#allocation10 + $0x8] sm:$0xff] }
  0x50   :  { %612 = vmatprep.subr.mxu1 %v851_v0  ;;  %v291_v24 = vld [vmem:[#allocation10 + $0x10] sm:$0xff]  ;;  %v289_v26 = vld [vmem:[#allocation10] sm:$0xff]  ;;  %v311_v27 = vld [vmem:[#allocation11 + $0x78] sm:$0xff] }
  0x51   :  { %613 = vmatpush3.msra.mxu1 %v200_v4  ;;  %v310_v28 = vld [vmem:[#allocation11 + $0x70] sm:$0xff]  ;;  %648 = vmatpush3.msra.mxu0 %v311_v27  ;;  %v309_v29 = vld [vmem:[#allocation11 + $0x68] sm:$0xff]  ;;  %v308_v30 = vld [vmem:[#allocation11 + $0x60] sm:$0xff] }
  0x52   :  { %614 = vmatprep.subr.mxu1 %v851_v0  ;;  %649 = vmatprep.subr.mxu0 %v851_v0  ;;  %v307_v31 = vld [vmem:[#allocation11 + $0x58] sm:$0xff]  ;;  %v306_v32 = vld [vmem:[#allocation11 + $0x50] sm:$0xff]  ;;  %v305_v33 = vld [vmem:[#allocation11 + $0x48] sm:$0xff] }
  0x53   :  { %615 = vmatpush3.msra.mxu1 %v199_v5  ;;  %650 = vmatpush3.msra.mxu0 %v310_v28  ;;  %v304_v34 = vld [vmem:[#allocation11 + $0x40] sm:$0xff]  ;;  %v303_v35 = vld [vmem:[#allocation11 + $0x38] sm:$0xff]  ;;  %v302_v36 = vld [vmem:[#allocation11 + $0x30] sm:$0xff] }
  0x54   :  { %616 = vmatprep.subr.mxu1 %v851_v0  ;;  %651 = vmatprep.subr.mxu0 %v851_v0  ;;  %v301_v37 = vld [vmem:[#allocation11 + $0x28] sm:$0xff]  ;;  %v300_v38 = vld [vmem:[#allocation11 + $0x20] sm:$0xff]  ;;  %v299_v39 = vld [vmem:[#allocation11 + $0x18] sm:$0xff] }
  0x55   :  { %617 = vmatpush3.msra.mxu1 %v198_v6  ;;  %652 = vmatpush3.msra.mxu0 %v309_v29  ;;  %v298_v40 = vld [vmem:[#allocation11 + $0x10] sm:$0xff]  ;;  %v565_v41 = vld [vmem:[%s1003_s6] ss:$0 sm:$0xff]  ;;  %v297_v46 = vld [vmem:[#allocation11 + $0x8] sm:$0xff]  ;;  %s853_s6 = smov [#allocation13]  }
  0x56   :  { %621 = vmatprep.subr.mxu1 %v851_v0  ;;  %653 = vmatprep.subr.mxu0 %v851_v0  ;;  %v296_v47 = vld [vmem:[#allocation11] sm:$0xff]  ;;  %s549_s25 = sshll.u32 %s853_s6, 4  ;;  %s550_s25 = int_to_ptr.vmem [resolvable:$true] %s549_s25 }
  0x57   :  { %654 = vmatpush3.msra.mxu0 %v308_v30  ;;  %v567_v48 = vld [vmem:[%s1005_s8] ss:$0 sm:$0xff]  ;;  %s813_s26 = scalar_lea.vmem %s550_s25, 128  ;;  %p818_p3 = scmp.lt.s32.totalorder %s550_s25, %s550_s25 }
  0x58   :  { %655 = vmatprep.subr.mxu0 %v851_v0  ;;  %p814_p2 = scmp.ne.s32.totalorder %s550_s25, %s813_s26  ;;  %p819_p4 = scmp.lt.s32.totalorder %s813_s26, %s813_s26 }
  0x59   :  { %656 = vmatpush3.msra.mxu0 %v307_v31 }
  0x5a   :  { %657 = vmatprep.subr.mxu0 %v851_v0  ;;  %p820_p5 = por %p819_p4, %p818_p3 }
  0x5b   :  { %658 = vmatpush3.msra.mxu0 %v306_v32 }
  0x5c   :  { %659 = vmatprep.subr.mxu0 %v851_v0  ;;  %p821_p6 = pnand %p820_p5, %p814_p2 }
  0x5d   :  { %660 = vmatpush3.msra.mxu0 %v305_v33 }
  0x5e   :  { %661 = vmatprep.subr.mxu0 %v851_v0 }
  0x5f   :  { %662 = vmatpush3.msra.mxu0 %v304_v34 }
  0x60   :  { %663 = vmatprep.subr.mxu0 %v851_v0 }
  0x61   :  { %664 = vmatpush3.msra.mxu0 %v303_v35 }
  0x62   :  { %665 = vmatprep.subr.mxu0 %v851_v0 }
  0x63   :  { %666 = vmatpush3.msra.mxu0 %v302_v36 }
  0x64   :  { %667 = vmatprep.subr.mxu0 %v851_v0 }
  0x65   :  { %668 = vmatpush3.msra.mxu0 %v301_v37 }
  0x66   :  { %669 = vmatprep.subr.mxu0 %v851_v0 }
  0x67   :  { %670 = vmatpush3.msra.mxu0 %v300_v38 }
  0x68   :  { %671 = vmatprep.subr.mxu0 %v851_v0 }
  0x69   :  { %672 = vmatpush3.msra.mxu0 %v299_v39 }
  0x6a   :  { %673 = vmatprep.subr.mxu0 %v851_v0 }
  0x6b   :  { %674 = vmatpush3.msra.mxu0 %v298_v40 }
  0x6c   :  { %675 = vmatprep.subr.mxu0 %v851_v0 }
  0x6d   :  { %676 = vmatpush3.msra.mxu0 %v297_v46 }
  0x6e   :  { %677 = vmatprep.subr.mxu0 %v851_v0 }
  0x6f   :  { %678 = vmatpush3.msra.mxu0 %v296_v47 }
 0x10e   :  { %v193_v8 = vpop.f32.mrf.mxu1 }
 0x10f   :  { %v194_v9 = vadd.f32 %v561_v7, %v193_v8 }
 0x110   :  { %v609_v10 = vpop.f32.mrf.mxu1 }
 0x111   :  { %v197_v11 = vmax.f32 %v194_v9, 0.0 }
 0x113   :  { %619 = vmatmul.mubr.msk.f32.vlgmr.msra.gmra.mxu1 %vm209_vm2, %v197_v11 }
 0x114   :  { %622 = vmatpush3.msra.mxu1 %v287_v12  ;;  %629 = vmatprep.mubr.msk.f32.mxu1 %vm852_vm0, %v851_v0 }
 0x115   :  { %623 = vmatprep.subr.mxu1 %v851_v0 }
 0x116   :  { %624 = vmatpush3.msra.mxu1 %v286_v13 }
 0x117   :  { %625 = vmatprep.subr.mxu1 %v851_v0 }
 0x118   :  { %626 = vmatpush3.msra.mxu1 %v285_v14 }
 0x119   :  { %627 = vmatprep.subr.mxu1 %v851_v0 }
 0x11a   :  { %628 = vmatpush3.msra.mxu1 %v284_v15 }
 0x11b   :  { %632 = vmatprep.subr.mxu1 %v851_v0 }
 0x1d3   :  { %v279_v17 = vpop.f32.mrf.mxu1 }
 0x1d4   :  { %v280_v18 = vadd.f32 %v563_v16, %v279_v17 }
 0x1d5   :  { %v620_v19 = vpop.f32.mrf.mxu1 }
 0x1d6   :  { %v283_v20 = vmax.f32 %v280_v18, 0.0 }
 0x1d8   :  { %630 = vmatmul.mubr.msk.f32.vlgmr.msra.gmra.mxu1 %vm209_vm2, %v283_v20 }
 0x1d9   :  { %633 = vmatpush3.msra.mxu1 %v294_v21  ;;  %644 = vmatprep.mubr.msk.f32.mxu1 %vm852_vm0, %v851_v0 }
 0x1da   :  { %634 = vmatprep.subr.mxu1 %v851_v0 }
 0x1db   :  { %635 = vmatpush3.msra.mxu1 %v293_v22 }
 0x1dc   :  { %636 = vmatprep.subr.mxu1 %v851_v0 }
 0x1dd   :  { %637 = vmatpush3.msra.mxu1 %v292_v23 }
 0x1de   :  { %638 = vmatprep.subr.mxu1 %v851_v0 }
 0x1df   :  { %639 = vmatpush3.msra.mxu1 %v291_v24 }
 0x1e0   :  { %640 = vmatprep.subr.mxu1 %v851_v0 }
 0x1e1   :  { %641 = vmatpush3.msra.mxu1 %v290_v25 }
 0x1e2   :  { %642 = vmatprep.subr.mxu1 %v851_v0 }
 0x1e3   :  { %643 = vmatpush3.msra.mxu1 %v289_v26 }
 0x298   :  { %v387_v42 = vpop.f32.mrf.mxu1 }
 0x299   :  { %v388_v43 = vadd.f32 %v565_v41, %v387_v42 }
 0x29a   :  { %v631_v44 = vpop.f32.mrf.mxu1 }
 0x29b   :  { %v391_v45 = vmax.f32 %v388_v43, 0.0 }
 0x29d   :  { %645 = vmatmul.mubr.msk.f32.vlgmr.msra.gmra.mxu1 %vm398_vm3, %v391_v45 }
 0x35d   :  { %v468_v49 = vpop.f32.mrf.mxu1 }
 0x35e   :  { %v469_v50 = vadd.f32 %v567_v48, %v468_v49 }
 0x35f   :  { %v646_v51 = vpop.f32.mrf.mxu1 }
 0x360   :  { %680 = vmatmul.mubr.f32.vlgmr.msra.gmra.mxu0 %v469_v50 }
 0x420   :  { %v538_v52 = vpop.f32.mrf.mxu0 }
 0x421   :  { %542 = vst [vmem:[#allocation13] sm:$0xff] %v538_v52 }
 0x422   :  { %v681_v53 = vpop.f32.mrf.mxu0 }
 0x423   :  { %824 = shalt.err (!%p821_p6)
}
 0x424   :  { %552 = dma.vmem_to_hbm [thread:$0]  %s550_s25, 128, %s1007_s10, [#allocation4]  }
 0x425   :  { %841 = dma.done.wait [#allocation4], 128  }
 0x426   :  { %842 = vsyncadd [#allocation4], 4294967168 }
 0x427   :  { %556 = vsyncpa [#allocation3], 1 }
 0x428   :  { %557 = vsyncpa [#allocation6], 1 }
 0x429   :  { %558 = vsyncpa [#allocation9], 1 }
 0x42a   :  { %559 = vsyncpa [#allocation12], 1 }
 0x42b   :  { %560 = vsyncpa [#allocation4], 1 }

</bundles_post_ra>
